<compile_context>
chip_gen: v5e
topology: v5e:2x2
jax: 0.10.0
libtpu: 0.0.40
codegen_flags: <defaults>
</compile_context>

<pallas_src>
import functools

import jax
import jax.numpy as jnp
from jax import lax
from jax.experimental import pallas as pl
from jax.experimental.pallas import tpu as pltpu


_LANES = 128

# Constants from GRDPINet.OneStep_forward (c1..c3 unused).  The module's
# 11-element `weights` Parameter is never used by the torch forward pass, so it
# is passed through untouched.
_A0, _A1, _A2, _A3, _A4 = 0.1, 0.2, 0.3, 0.4, 0.5
_H, _BETA, _BIAS = 0.1, 2.0, 0.0
_BIG = 1e30        # finite "infinity" for the tail mask (no inf propagation)


def _round_up(x, m):
    return ((x + m - 1) // m) * m


def grdpi_kernel(x_ref, xp_ref, z0_ref, out_ref, zout_ref,
                 z_scr, base, lo1, lo2, lo3, lo4, hi1, hi2, hi3, hi4,
                 *, total_t, t_block):
    ti = pl.program_id(1)
    nt = pl.num_programs(1)

    # (Re-)initialize the recurrent state at the start of each batch block.
    # State is carried PRE-SCALED by A_i (A_i > 0, so clamp commutes with it).
    @pl.when(ti == 0)
    def _():
        z_scr[0:1, :] = _A1 * z0_ref[0:1, :]
        z_scr[1:2, :] = _A2 * z0_ref[1:2, :]
        z_scr[2:3, :] = _A3 * z0_ref[2:3, :]
        z_scr[3:4, :] = _A4 * z0_ref[3:4, :]

    # ---- bulk (vectorized) precompute over the whole (t_block, B) slab ----
    u = x_ref[...]
    du = u - xp_ref[...]
    s = _BETA * jnp.sqrt(du * du + 1e-10)     # EUP sqrt, off the serial path

    full_tail = (total_t % t_block) == 0      # python-static
    if not full_tail:
        # Tail mask hoisted out of the recurrence: past-the-end rows get a huge
        # radius so clamp(z, -BIG, +BIG) == z carries the state unchanged.
        row = lax.broadcasted_iota(jnp.int32, (t_block, _LANES), 0)
        s = jnp.where(row + ti * t_block < total_t, s, _BIG)

    base[...] = _A0 * u + _BIAS               # output base term, hoisted
    r1 = s + _H * 1.0
    r2 = s + _H * 2.0
    r3 = s + _H * 3.0
    r4 = s + _H * 4.0
    lo1[...] = _A1 * (u - r1)
    lo2[...] = _A2 * (u - r2)
    lo3[...] = _A3 * (u - r3)
    lo4[...] = _A4 * (u - r4)
    hi1[...] = _A1 * (u + r1)
    hi2[...] = _A2 * (u + r2)
    hi3[...] = _A3 * (u + r3)
    hi4[...] = _A4 * (u + r4)

    # ---- serial recurrence; scaled z kept in registers for the whole block --
    z1 = z_scr[0:1, :]
    z2 = z_scr[1:2, :]
    z3 = z_scr[2:3, :]
    z4 = z_scr[3:4, :]

    def body(t, carry):
        z1, z2, z3, z4 = carry
        row = pl.ds(t, 1)
        # play operator (pre-scaled): z'_i <- clamp(z'_i, A_i(u-r_i), A_i(u+r_i))
        # (identical to the two-relu form because r_i >= 0)
        n1 = jnp.minimum(jnp.maximum(z1, lo1[row, :]), hi1[row, :])
        n2 = jnp.minimum(jnp.maximum(z2, lo2[row, :]), hi2[row, :])
        n3 = jnp.minimum(jnp.maximum(z3, lo3[row, :]), hi3[row, :])
        n4 = jnp.minimum(jnp.maximum(z4, lo4[row, :]), hi4[row, :])
        out_ref[row, :] = base[row, :] + (n1 + n2) + (n3 + n4)
        return (n1, n2, n3, n4)

    z1, z2, z3, z4 = lax.fori_loop(0, t_block, body, (z1, z2, z3, z4),
                                   unroll=min(8, t_block))

    # carry scaled state to the next time block
    z_scr[0:1, :] = z1
    z_scr[1:2, :] = z2
    z_scr[2:3, :] = z3
    z_scr[3:4, :] = z4

    @pl.when(ti == nt - 1)
    def _():
        zout_ref[0:1, :] = z1 * (1.0 / _A1)
        zout_ref[1:2, :] = z2 * (1.0 / _A2)
        zout_ref[2:3, :] = z3 * (1.0 / _A3)
        zout_ref[3:4, :] = z4 * (1.0 / _A4)
        zout_ref[4:8, :] = jnp.zeros((4, _LANES), jnp.float32)


def grdpi_forward(x, x_pre, z_init, weights, t_block=2048):
    """x, x_pre: (B, T, 1); z_init: (B, 1, 4). Matches GRDPINet.forward."""
    B, T, D = x.shape
    assert D == 1, "GRDPINet forward implies feature dim 1"

    f32 = jnp.float32
    B_pad = _round_up(max(B, 1), _LANES)
    t_block = min(t_block, _round_up(T, 8))
    T_pad = _round_up(T, t_block)
    nb = B_pad // _LANES
    nt = T_pad // t_block

    # (T, B) layout: time on sublanes, batch on lanes (lane-dense stores).
    x_tb = jnp.pad(x[..., 0].astype(f32).T, ((0, T_pad - T), (0, B_pad - B)))
    xp_tb = jnp.pad(x_pre[..., 0].astype(f32).T, ((0, T_pad - T), (0, B_pad - B)))
    z0 = jnp.pad(z_init[:, 0, :].astype(f32).T, ((0, 4), (0, B_pad - B)))

    kernel = functools.partial(grdpi_kernel, total_t=T, t_block=t_block)

    out_tb, z_out = pl.pallas_call(
        kernel,
        out_shape=(
            jax.ShapeDtypeStruct((T_pad, B_pad), f32),
            jax.ShapeDtypeStruct((8, B_pad), f32),
        ),
        grid=(nb, nt),
        in_specs=[
            pl.BlockSpec((t_block, _LANES), lambda bi, ti: (ti, bi)),
            pl.BlockSpec((t_block, _LANES), lambda bi, ti: (ti, bi)),
            pl.BlockSpec((8, _LANES), lambda bi, ti: (0, bi)),
        ],
        out_specs=(
            pl.BlockSpec((t_block, _LANES), lambda bi, ti: (ti, bi)),
            pl.BlockSpec((8, _LANES), lambda bi, ti: (0, bi)),
        ),
        scratch_shapes=[pltpu.VMEM((8, _LANES), f32)]                       # z state
                      + [pltpu.VMEM((t_block, _LANES), f32) for _ in range(9)],  # base + 4 lo + 4 hi
        compiler_params=pltpu.CompilerParams(
            dimension_semantics=("parallel", "arbitrary"),
            vmem_limit_bytes=32 * 1024 * 1024),
    )(x_tb, xp_tb, z0)

    # Match PyTorch return shapes: (B, T, 1), (11,), (B, 1, 4)
    out = out_tb[:T, :B].T[..., None]
    z_final = z_out[:4, :B].T[:, None, :]
    return out, weights, z_final


# ---------------- pure-JAX reference (mirrors the torch code) ----------------
def _ref_forward(x, x_pre, z_init):
    def zi(u, r, z_pre):
        return u - r + jax.nn.relu(u + r - jax.nn.relu(u + r - z_pre) - (u - r))

    def ri(h, i, beta, du):
        return h * i + beta * jnp.sqrt(du * du + 1e-10)

    a0, a1, a2, a3, a4, h, beta, b = 0.1, 0.2, 0.3, 0.4, 0.5, 0.1, 2.0, 0.0
    z = z_init
    outs = []
    for i in range(x.shape[1]):
        u = x[:, i:i + 1, :]
        u_pre = x_pre[:, i:i + 1, :]
        du = u - u_pre
        r1, r2, r3, r4 = ri(h, 1, beta, du), ri(h, 2, beta, du), ri(h, 3, beta, du), ri(h, 4, beta, du)
        z1 = zi(u, r1, z[:, :, 0:1])
        z2 = zi(u, r2, z[:, :, 1:2])
        z3 = zi(u, r3, z[:, :, 2:3])
        z4 = zi(u, r4, z[:, :, 3:4])
        out = a0 * u + a1 * z1 + a2 * z2 + a3 * z3 + a4 * z4 + b
        z = jnp.concatenate([z1, z2, z3, z4], axis=2)
        outs.append(out)
    return jnp.concatenate(outs, axis=1), z


if __name__ == "__main__":
    key = jax.random.PRNGKey(0)

    # nn.Parameter(torch.ones(11) * 0.5) — deterministic init, passed through.
    weights = jnp.ones((11,), dtype=jnp.float32) * 0.5

    def run_case(B, T, k):
        k1, k2, k3 = jax.random.split(k, 3)
        x = jax.random.normal(k1, (B, T, 1), dtype=jnp.float32)
        x_pre = jax.random.normal(k2, (B, T, 1), dtype=jnp.float32)
        z_init = jax.random.normal(k3, (B, 1, 4), dtype=jnp.float32)

        out, w, z_final = grdpi_forward(x, x_pre, z_init, weights)
        jax.block_until_ready((out, w, z_final))

        ref_out, ref_z = _ref_forward(x, x_pre, z_init)
        assert out.shape == (B, T, 1) and z_final.shape == (B, 1, 4) and w.shape == (11,)
        assert jnp.allclose(out, ref_out, atol=1e-5, rtol=1e-5)
        assert jnp.allclose(z_final, ref_z, atol=1e-5, rtol=1e-5)

    k_a, k_b = jax.random.split(key)
    run_case(2, 8, k_a)    # aligned time block (no tail mask)
    run_case(3, 13, k_b)   # partial last time block (bulk tail mask path)
    print("KERNEL_OK")
</pallas_src>

<mosaic_0001>
module attributes {stable_mosaic.version = 11 : i64} {
  func.func @grdpi_kernel(%arg0: i32, %arg1: i32, %arg2: memref<8x128xf32, #tpu.memory_space<vmem>>, %arg3: memref<8x128xf32, #tpu.memory_space<vmem>>, %arg4: memref<8x128xf32, #tpu.memory_space<vmem>>, %arg5: memref<8x128xf32, #tpu.memory_space<vmem>>, %arg6: memref<8x128xf32, #tpu.memory_space<vmem>>, %arg7: memref<8x128xf32, #tpu.memory_space<vmem>>, %arg8: memref<8x128xf32, #tpu.memory_space<vmem>>, %arg9: memref<8x128xf32, #tpu.memory_space<vmem>>, %arg10: memref<8x128xf32, #tpu.memory_space<vmem>>, %arg11: memref<8x128xf32, #tpu.memory_space<vmem>>, %arg12: memref<8x128xf32, #tpu.memory_space<vmem>>, %arg13: memref<8x128xf32, #tpu.memory_space<vmem>>, %arg14: memref<8x128xf32, #tpu.memory_space<vmem>>, %arg15: memref<8x128xf32, #tpu.memory_space<vmem>>, %arg16: memref<8x128xf32, #tpu.memory_space<vmem>>) attributes {dimension_semantics = [#tpu.dimension_semantics<parallel>, #tpu.dimension_semantics<arbitrary>], iteration_bounds = array<i64: 1, 1>, scalar_prefetch = 0 : i64, scratch_operands = 10 : i64, tpu.core_type = #tpu.core_type<tc>, window_params = [{transform_indices = @transform_0, window_bounds = array<i64: 8, 128>}, {transform_indices = @transform_1, window_bounds = array<i64: 8, 128>}, {transform_indices = @transform_2, window_bounds = array<i64: 8, 128>}, {transform_indices = @transform_3, window_bounds = array<i64: 8, 128>}, {transform_indices = @transform_4, window_bounds = array<i64: 8, 128>}]} {
    %c0_i32 = arith.constant 0 : i32
    %0 = arith.cmpi eq, %arg1, %c0_i32 : i32
    %1 = arith.extui %0 : i1 to i32
    %c0_i32_0 = arith.constant 0 : i32
    %2 = arith.cmpi ne, %1, %c0_i32_0 : i32
    scf.if %2 {
      %c0_133 = arith.constant 0 : index
      %c0_134 = arith.constant 0 : index
      %324 = vector.load %arg4[%c0_133, %c0_134] : memref<8x128xf32, #tpu.memory_space<vmem>>, vector<1x128xf32>
      %cst_135 = arith.constant 2.000000e-01 : f32
      %325 = vector.broadcast %cst_135 : f32 to vector<1x128xf32>
      %326 = arith.mulf %325, %324 : vector<1x128xf32>
      %c0_136 = arith.constant 0 : index
      %c0_137 = arith.constant 0 : index
      %327 = vector.load %arg7[%c0_136, %c0_137] : memref<8x128xf32, #tpu.memory_space<vmem>>, vector<1x128xf32>
      tpu.vector_store %arg7[%c0_136, %c0_137], %326 {strides = array<i32>} : memref<8x128xf32, #tpu.memory_space<vmem>>, vector<1x128xf32>,
      %c1_138 = arith.constant 1 : index
      %c0_139 = arith.constant 0 : index
      %328 = vector.load %arg4[%c1_138, %c0_139] : memref<8x128xf32, #tpu.memory_space<vmem>>, vector<1x128xf32>
      %cst_140 = arith.constant 3.000000e-01 : f32
      %329 = vector.broadcast %cst_140 : f32 to vector<1x128xf32>
      %330 = arith.mulf %329, %328 : vector<1x128xf32>
      %c1_141 = arith.constant 1 : index
      %c0_142 = arith.constant 0 : index
      %331 = vector.load %arg7[%c1_141, %c0_142] : memref<8x128xf32, #tpu.memory_space<vmem>>, vector<1x128xf32>
      tpu.vector_store %arg7[%c1_141, %c0_142], %330 {strides = array<i32>} : memref<8x128xf32, #tpu.memory_space<vmem>>, vector<1x128xf32>,
      %c2_143 = arith.constant 2 : index
      %c0_144 = arith.constant 0 : index
      %332 = vector.load %arg4[%c2_143, %c0_144] : memref<8x128xf32, #tpu.memory_space<vmem>>, vector<1x128xf32>
      %cst_145 = arith.constant 4.000000e-01 : f32
      %333 = vector.broadcast %cst_145 : f32 to vector<1x128xf32>
      %334 = arith.mulf %333, %332 : vector<1x128xf32>
      %c2_146 = arith.constant 2 : index
      %c0_147 = arith.constant 0 : index
      %335 = vector.load %arg7[%c2_146, %c0_147] : memref<8x128xf32, #tpu.memory_space<vmem>>, vector<1x128xf32>
      tpu.vector_store %arg7[%c2_146, %c0_147], %334 {strides = array<i32>} : memref<8x128xf32, #tpu.memory_space<vmem>>, vector<1x128xf32>,
      %c3_148 = arith.constant 3 : index
      %c0_149 = arith.constant 0 : index
      %336 = vector.load %arg4[%c3_148, %c0_149] : memref<8x128xf32, #tpu.memory_space<vmem>>, vector<1x128xf32>
      %cst_150 = arith.constant 5.000000e-01 : f32
      %337 = vector.broadcast %cst_150 : f32 to vector<1x128xf32>
      %338 = arith.mulf %337, %336 : vector<1x128xf32>
      %c3_151 = arith.constant 3 : index
      %c0_152 = arith.constant 0 : index
      %339 = vector.load %arg7[%c3_151, %c0_152] : memref<8x128xf32, #tpu.memory_space<vmem>>, vector<1x128xf32>
      tpu.vector_store %arg7[%c3_151, %c0_152], %338 {strides = array<i32>} : memref<8x128xf32, #tpu.memory_space<vmem>>, vector<1x128xf32>,
    } else {
    }
    %c0 = arith.constant 0 : index
    %c0_1 = arith.constant 0 : index
    %3 = vector.load %arg2[%c0, %c0_1] : memref<8x128xf32, #tpu.memory_space<vmem>>, vector<8x128xf32>
    %c0_2 = arith.constant 0 : index
    %c0_3 = arith.constant 0 : index
    %4 = vector.load %arg3[%c0_2, %c0_3] : memref<8x128xf32, #tpu.memory_space<vmem>>, vector<8x128xf32>
    %5 = arith.subf %3, %4 : vector<8x128xf32>
    %6 = arith.mulf %5, %5 : vector<8x128xf32>
    %cst = arith.constant 1.000000e-10 : f32
    %7 = vector.broadcast %cst : f32 to vector<8x128xf32>
    %8 = arith.addf %6, %7 : vector<8x128xf32>
    %9 = math.sqrt %8 : vector<8x128xf32>
    %cst_4 = arith.constant 2.000000e+00 : f32
    %10 = vector.broadcast %cst_4 : f32 to vector<8x128xf32>
    %11 = arith.mulf %10, %9 : vector<8x128xf32>
    %cst_5 = arith.constant 1.000000e-01 : f32
    %12 = vector.broadcast %cst_5 : f32 to vector<8x128xf32>
    %13 = arith.mulf %12, %3 : vector<8x128xf32>
    %cst_6 = arith.constant 0.000000e+00 : f32
    %14 = vector.broadcast %cst_6 : f32 to vector<8x128xf32>
    %15 = arith.addf %13, %14 : vector<8x128xf32>
    %c0_7 = arith.constant 0 : index
    %c0_8 = arith.constant 0 : index
    %16 = vector.load %arg8[%c0_7, %c0_8] : memref<8x128xf32, #tpu.memory_space<vmem>>, vector<8x128xf32>
    tpu.vector_store %arg8[%c0_7, %c0_8], %15 {strides = array<i32>} : memref<8x128xf32, #tpu.memory_space<vmem>>, vector<8x128xf32>,
    %cst_9 = arith.constant 1.000000e-01 : f32
    %17 = vector.broadcast %cst_9 : f32 to vector<8x128xf32>
    %18 = arith.addf %11, %17 : vector<8x128xf32>
    %cst_10 = arith.constant 2.000000e-01 : f32
    %19 = vector.broadcast %cst_10 : f32 to vector<8x128xf32>
    %20 = arith.addf %11, %19 : vector<8x128xf32>
    %cst_11 = arith.constant 3.000000e-01 : f32
    %21 = vector.broadcast %cst_11 : f32 to vector<8x128xf32>
    %22 = arith.addf %11, %21 : vector<8x128xf32>
    %cst_12 = arith.constant 4.000000e-01 : f32
    %23 = vector.broadcast %cst_12 : f32 to vector<8x128xf32>
    %24 = arith.addf %11, %23 : vector<8x128xf32>
    %25 = arith.subf %3, %18 : vector<8x128xf32>
    %cst_13 = arith.constant 2.000000e-01 : f32
    %26 = vector.broadcast %cst_13 : f32 to vector<8x128xf32>
    %27 = arith.mulf %26, %25 : vector<8x128xf32>
    %c0_14 = arith.constant 0 : index
    %c0_15 = arith.constant 0 : index
    %28 = vector.load %arg9[%c0_14, %c0_15] : memref<8x128xf32, #tpu.memory_space<vmem>>, vector<8x128xf32>
    tpu.vector_store %arg9[%c0_14, %c0_15], %27 {strides = array<i32>} : memref<8x128xf32, #tpu.memory_space<vmem>>, vector<8x128xf32>,
    %29 = arith.subf %3, %20 : vector<8x128xf32>
    %cst_16 = arith.constant 3.000000e-01 : f32
    %30 = vector.broadcast %cst_16 : f32 to vector<8x128xf32>
    %31 = arith.mulf %30, %29 : vector<8x128xf32>
    %c0_17 = arith.constant 0 : index
    %c0_18 = arith.constant 0 : index
    %32 = vector.load %arg10[%c0_17, %c0_18] : memref<8x128xf32, #tpu.memory_space<vmem>>, vector<8x128xf32>
    tpu.vector_store %arg10[%c0_17, %c0_18], %31 {strides = array<i32>} : memref<8x128xf32, #tpu.memory_space<vmem>>, vector<8x128xf32>,
    %33 = arith.subf %3, %22 : vector<8x128xf32>
    %cst_19 = arith.constant 4.000000e-01 : f32
    %34 = vector.broadcast %cst_19 : f32 to vector<8x128xf32>
    %35 = arith.mulf %34, %33 : vector<8x128xf32>
    %c0_20 = arith.constant 0 : index
    %c0_21 = arith.constant 0 : index
    %36 = vector.load %arg11[%c0_20, %c0_21] : memref<8x128xf32, #tpu.memory_space<vmem>>, vector<8x128xf32>
    tpu.vector_store %arg11[%c0_20, %c0_21], %35 {strides = array<i32>} : memref<8x128xf32, #tpu.memory_space<vmem>>, vector<8x128xf32>,
    %37 = arith.subf %3, %24 : vector<8x128xf32>
    %cst_22 = arith.constant 5.000000e-01 : f32
    %38 = vector.broadcast %cst_22 : f32 to vector<8x128xf32>
    %39 = arith.mulf %38, %37 : vector<8x128xf32>
    %c0_23 = arith.constant 0 : index
    %c0_24 = arith.constant 0 : index
    %40 = vector.load %arg12[%c0_23, %c0_24] : memref<8x128xf32, #tpu.memory_space<vmem>>, vector<8x128xf32>
    tpu.vector_store %arg12[%c0_23, %c0_24], %39 {strides = array<i32>} : memref<8x128xf32, #tpu.memory_space<vmem>>, vector<8x128xf32>,
    %41 = arith.addf %3, %18 : vector<8x128xf32>
    %cst_25 = arith.constant 2.000000e-01 : f32
    %42 = vector.broadcast %cst_25 : f32 to vector<8x128xf32>
    %43 = arith.mulf %42, %41 : vector<8x128xf32>
    %c0_26 = arith.constant 0 : index
    %c0_27 = arith.constant 0 : index
    %44 = vector.load %arg13[%c0_26, %c0_27] : memref<8x128xf32, #tpu.memory_space<vmem>>, vector<8x128xf32>
    tpu.vector_store %arg13[%c0_26, %c0_27], %43 {strides = array<i32>} : memref<8x128xf32, #tpu.memory_space<vmem>>, vector<8x128xf32>,
    %45 = arith.addf %3, %20 : vector<8x128xf32>
    %cst_28 = arith.constant 3.000000e-01 : f32
    %46 = vector.broadcast %cst_28 : f32 to vector<8x128xf32>
    %47 = arith.mulf %46, %45 : vector<8x128xf32>
    %c0_29 = arith.constant 0 : index
    %c0_30 = arith.constant 0 : index
    %48 = vector.load %arg14[%c0_29, %c0_30] : memref<8x128xf32, #tpu.memory_space<vmem>>, vector<8x128xf32>
    tpu.vector_store %arg14[%c0_29, %c0_30], %47 {strides = array<i32>} : memref<8x128xf32, #tpu.memory_space<vmem>>, vector<8x128xf32>,
    %49 = arith.addf %3, %22 : vector<8x128xf32>
    %cst_31 = arith.constant 4.000000e-01 : f32
    %50 = vector.broadcast %cst_31 : f32 to vector<8x128xf32>
    %51 = arith.mulf %50, %49 : vector<8x128xf32>
    %c0_32 = arith.constant 0 : index
    %c0_33 = arith.constant 0 : index
    %52 = vector.load %arg15[%c0_32, %c0_33] : memref<8x128xf32, #tpu.memory_space<vmem>>, vector<8x128xf32>
    tpu.vector_store %arg15[%c0_32, %c0_33], %51 {strides = array<i32>} : memref<8x128xf32, #tpu.memory_space<vmem>>, vector<8x128xf32>,
    %53 = arith.addf %3, %24 : vector<8x128xf32>
    %cst_34 = arith.constant 5.000000e-01 : f32
    %54 = vector.broadcast %cst_34 : f32 to vector<8x128xf32>
    %55 = arith.mulf %54, %53 : vector<8x128xf32>
    %c0_35 = arith.constant 0 : index
    %c0_36 = arith.constant 0 : index
    %56 = vector.load %arg16[%c0_35, %c0_36] : memref<8x128xf32, #tpu.memory_space<vmem>>, vector<8x128xf32>
    tpu.vector_store %arg16[%c0_35, %c0_36], %55 {strides = array<i32>} : memref<8x128xf32, #tpu.memory_space<vmem>>, vector<8x128xf32>,
    %c0_37 = arith.constant 0 : index
    %c0_38 = arith.constant 0 : index
    %57 = vector.load %arg7[%c0_37, %c0_38] : memref<8x128xf32, #tpu.memory_space<vmem>>, vector<1x128xf32>
    %c1 = arith.constant 1 : index
    %c0_39 = arith.constant 0 : index
    %58 = vector.load %arg7[%c1, %c0_39] : memref<8x128xf32, #tpu.memory_space<vmem>>, vector<1x128xf32>
    %c2 = arith.constant 2 : index
    %c0_40 = arith.constant 0 : index
    %59 = vector.load %arg7[%c2, %c0_40] : memref<8x128xf32, #tpu.memory_space<vmem>>, vector<1x128xf32>
    %c3 = arith.constant 3 : index
    %c0_41 = arith.constant 0 : index
    %60 = vector.load %arg7[%c3, %c0_41] : memref<8x128xf32, #tpu.memory_space<vmem>>, vector<1x128xf32>
    %c0_i32_42 = arith.constant 0 : i32
    %61 = arith.index_cast %c0_i32_42 : i32 to index
    %c0_43 = arith.constant 0 : index
    %62 = vector.load %arg9[%61, %c0_43] : memref<8x128xf32, #tpu.memory_space<vmem>>, vector<1x128xf32>
    %63 = arith.maximumf %57, %62 : vector<1x128xf32>
    %64 = arith.index_cast %c0_i32_42 : i32 to index
    %c0_44 = arith.constant 0 : index
    %65 = vector.load %arg13[%64, %c0_44] : memref<8x128xf32, #tpu.memory_space<vmem>>, vector<1x128xf32>
    %66 = arith.minimumf %63, %65 : vector<1x128xf32>
    %67 = arith.index_cast %c0_i32_42 : i32 to index
    %c0_45 = arith.constant 0 : index
    %68 = vector.load %arg10[%67, %c0_45] : memref<8x128xf32, #tpu.memory_space<vmem>>, vector<1x128xf32>
    %69 = arith.maximumf %58, %68 : vector<1x128xf32>
    %70 = arith.index_cast %c0_i32_42 : i32 to index
    %c0_46 = arith.constant 0 : index
    %71 = vector.load %arg14[%70, %c0_46] : memref<8x128xf32, #tpu.memory_space<vmem>>, vector<1x128xf32>
    %72 = arith.minimumf %69, %71 : vector<1x128xf32>
    %73 = arith.index_cast %c0_i32_42 : i32 to index
    %c0_47 = arith.constant 0 : index
    %74 = vector.load %arg11[%73, %c0_47] : memref<8x128xf32, #tpu.memory_space<vmem>>, vector<1x128xf32>
    %75 = arith.maximumf %59, %74 : vector<1x128xf32>
    %76 = arith.index_cast %c0_i32_42 : i32 to index
    %c0_48 = arith.constant 0 : index
    %77 = vector.load %arg15[%76, %c0_48] : memref<8x128xf32, #tpu.memory_space<vmem>>, vector<1x128xf32>
    %78 = arith.minimumf %75, %77 : vector<1x128xf32>
    %79 = arith.index_cast %c0_i32_42 : i32 to index
    %c0_49 = arith.constant 0 : index
    %80 = vector.load %arg12[%79, %c0_49] : memref<8x128xf32, #tpu.memory_space<vmem>>, vector<1x128xf32>
    %81 = arith.maximumf %60, %80 : vector<1x128xf32>
    %82 = arith.index_cast %c0_i32_42 : i32 to index
    %c0_50 = arith.constant 0 : index
    %83 = vector.load %arg16[%82, %c0_50] : memref<8x128xf32, #tpu.memory_space<vmem>>, vector<1x128xf32>
    %84 = arith.minimumf %81, %83 : vector<1x128xf32>
    %85 = arith.index_cast %c0_i32_42 : i32 to index
    %c0_51 = arith.constant 0 : index
    %86 = vector.load %arg8[%85, %c0_51] : memref<8x128xf32, #tpu.memory_space<vmem>>, vector<1x128xf32>
    %87 = arith.addf %66, %72 : vector<1x128xf32>
    %88 = arith.addf %86, %87 : vector<1x128xf32>
    %89 = arith.addf %78, %84 : vector<1x128xf32>
    %90 = arith.addf %88, %89 : vector<1x128xf32>
    %91 = arith.index_cast %c0_i32_42 : i32 to index
    %c0_52 = arith.constant 0 : index
    %92 = vector.load %arg5[%91, %c0_52] : memref<8x128xf32, #tpu.memory_space<vmem>>, vector<1x128xf32>
    tpu.vector_store %arg5[%91, %c0_52], %90 {strides = array<i32>} : memref<8x128xf32, #tpu.memory_space<vmem>>, vector<1x128xf32>,
    %c1_i32 = arith.constant 1 : i32
    %93 = arith.index_cast %c1_i32 : i32 to index
    %c0_53 = arith.constant 0 : index
    %94 = vector.load %arg9[%93, %c0_53] : memref<8x128xf32, #tpu.memory_space<vmem>>, vector<1x128xf32>
    %95 = arith.maximumf %66, %94 : vector<1x128xf32>
    %96 = arith.index_cast %c1_i32 : i32 to index
    %c0_54 = arith.constant 0 : index
    %97 = vector.load %arg13[%96, %c0_54] : memref<8x128xf32, #tpu.memory_space<vmem>>, vector<1x128xf32>
    %98 = arith.minimumf %95, %97 : vector<1x128xf32>
    %99 = arith.index_cast %c1_i32 : i32 to index
    %c0_55 = arith.constant 0 : index
    %100 = vector.load %arg10[%99, %c0_55] : memref<8x128xf32, #tpu.memory_space<vmem>>, vector<1x128xf32>
    %101 = arith.maximumf %72, %100 : vector<1x128xf32>
    %102 = arith.index_cast %c1_i32 : i32 to index
    %c0_56 = arith.constant 0 : index
    %103 = vector.load %arg14[%102, %c0_56] : memref<8x128xf32, #tpu.memory_space<vmem>>, vector<1x128xf32>
    %104 = arith.minimumf %101, %103 : vector<1x128xf32>
    %105 = arith.index_cast %c1_i32 : i32 to index
    %c0_57 = arith.constant 0 : index
    %106 = vector.load %arg11[%105, %c0_57] : memref<8x128xf32, #tpu.memory_space<vmem>>, vector<1x128xf32>
    %107 = arith.maximumf %78, %106 : vector<1x128xf32>
    %108 = arith.index_cast %c1_i32 : i32 to index
    %c0_58 = arith.constant 0 : index
    %109 = vector.load %arg15[%108, %c0_58] : memref<8x128xf32, #tpu.memory_space<vmem>>, vector<1x128xf32>
    %110 = arith.minimumf %107, %109 : vector<1x128xf32>
    %111 = arith.index_cast %c1_i32 : i32 to index
    %c0_59 = arith.constant 0 : index
    %112 = vector.load %arg12[%111, %c0_59] : memref<8x128xf32, #tpu.memory_space<vmem>>, vector<1x128xf32>
    %113 = arith.maximumf %84, %112 : vector<1x128xf32>
    %114 = arith.index_cast %c1_i32 : i32 to index
    %c0_60 = arith.constant 0 : index
    %115 = vector.load %arg16[%114, %c0_60] : memref<8x128xf32, #tpu.memory_space<vmem>>, vector<1x128xf32>
    %116 = arith.minimumf %113, %115 : vector<1x128xf32>
    %117 = arith.index_cast %c1_i32 : i32 to index
    %c0_61 = arith.constant 0 : index
    %118 = vector.load %arg8[%117, %c0_61] : memref<8x128xf32, #tpu.memory_space<vmem>>, vector<1x128xf32>
    %119 = arith.addf %98, %104 : vector<1x128xf32>
    %120 = arith.addf %118, %119 : vector<1x128xf32>
    %121 = arith.addf %110, %116 : vector<1x128xf32>
    %122 = arith.addf %120, %121 : vector<1x128xf32>
    %123 = arith.index_cast %c1_i32 : i32 to index
    %c0_62 = arith.constant 0 : index
    %124 = vector.load %arg5[%123, %c0_62] : memref<8x128xf32, #tpu.memory_space<vmem>>, vector<1x128xf32>
    tpu.vector_store %arg5[%123, %c0_62], %122 {strides = array<i32>} : memref<8x128xf32, #tpu.memory_space<vmem>>, vector<1x128xf32>,
    %c2_i32 = arith.constant 2 : i32
    %125 = arith.index_cast %c2_i32 : i32 to index
    %c0_63 = arith.constant 0 : index
    %126 = vector.load %arg9[%125, %c0_63] : memref<8x128xf32, #tpu.memory_space<vmem>>, vector<1x128xf32>
    %127 = arith.maximumf %98, %126 : vector<1x128xf32>
    %128 = arith.index_cast %c2_i32 : i32 to index
    %c0_64 = arith.constant 0 : index
    %129 = vector.load %arg13[%128, %c0_64] : memref<8x128xf32, #tpu.memory_space<vmem>>, vector<1x128xf32>
    %130 = arith.minimumf %127, %129 : vector<1x128xf32>
    %131 = arith.index_cast %c2_i32 : i32 to index
    %c0_65 = arith.constant 0 : index
    %132 = vector.load %arg10[%131, %c0_65] : memref<8x128xf32, #tpu.memory_space<vmem>>, vector<1x128xf32>
    %133 = arith.maximumf %104, %132 : vector<1x128xf32>
    %134 = arith.index_cast %c2_i32 : i32 to index
    %c0_66 = arith.constant 0 : index
    %135 = vector.load %arg14[%134, %c0_66] : memref<8x128xf32, #tpu.memory_space<vmem>>, vector<1x128xf32>
    %136 = arith.minimumf %133, %135 : vector<1x128xf32>
    %137 = arith.index_cast %c2_i32 : i32 to index
    %c0_67 = arith.constant 0 : index
    %138 = vector.load %arg11[%137, %c0_67] : memref<8x128xf32, #tpu.memory_space<vmem>>, vector<1x128xf32>
    %139 = arith.maximumf %110, %138 : vector<1x128xf32>
    %140 = arith.index_cast %c2_i32 : i32 to index
    %c0_68 = arith.constant 0 : index
    %141 = vector.load %arg15[%140, %c0_68] : memref<8x128xf32, #tpu.memory_space<vmem>>, vector<1x128xf32>
    %142 = arith.minimumf %139, %141 : vector<1x128xf32>
    %143 = arith.index_cast %c2_i32 : i32 to index
    %c0_69 = arith.constant 0 : index
    %144 = vector.load %arg12[%143, %c0_69] : memref<8x128xf32, #tpu.memory_space<vmem>>, vector<1x128xf32>
    %145 = arith.maximumf %116, %144 : vector<1x128xf32>
    %146 = arith.index_cast %c2_i32 : i32 to index
    %c0_70 = arith.constant 0 : index
    %147 = vector.load %arg16[%146, %c0_70] : memref<8x128xf32, #tpu.memory_space<vmem>>, vector<1x128xf32>
    %148 = arith.minimumf %145, %147 : vector<1x128xf32>
    %149 = arith.index_cast %c2_i32 : i32 to index
    %c0_71 = arith.constant 0 : index
    %150 = vector.load %arg8[%149, %c0_71] : memref<8x128xf32, #tpu.memory_space<vmem>>, vector<1x128xf32>
    %151 = arith.addf %130, %136 : vector<1x128xf32>
    %152 = arith.addf %150, %151 : vector<1x128xf32>
    %153 = arith.addf %142, %148 : vector<1x128xf32>
    %154 = arith.addf %152, %153 : vector<1x128xf32>
    %155 = arith.index_cast %c2_i32 : i32 to index
    %c0_72 = arith.constant 0 : index
    %156 = vector.load %arg5[%155, %c0_72] : memref<8x128xf32, #tpu.memory_space<vmem>>, vector<1x128xf32>
    tpu.vector_store %arg5[%155, %c0_72], %154 {strides = array<i32>} : memref<8x128xf32, #tpu.memory_space<vmem>>, vector<1x128xf32>,
    %c3_i32 = arith.constant 3 : i32
    %157 = arith.index_cast %c3_i32 : i32 to index
    %c0_73 = arith.constant 0 : index
    %158 = vector.load %arg9[%157, %c0_73] : memref<8x128xf32, #tpu.memory_space<vmem>>, vector<1x128xf32>
    %159 = arith.maximumf %130, %158 : vector<1x128xf32>
    %160 = arith.index_cast %c3_i32 : i32 to index
    %c0_74 = arith.constant 0 : index
    %161 = vector.load %arg13[%160, %c0_74] : memref<8x128xf32, #tpu.memory_space<vmem>>, vector<1x128xf32>
    %162 = arith.minimumf %159, %161 : vector<1x128xf32>
    %163 = arith.index_cast %c3_i32 : i32 to index
    %c0_75 = arith.constant 0 : index
    %164 = vector.load %arg10[%163, %c0_75] : memref<8x128xf32, #tpu.memory_space<vmem>>, vector<1x128xf32>
    %165 = arith.maximumf %136, %164 : vector<1x128xf32>
    %166 = arith.index_cast %c3_i32 : i32 to index
    %c0_76 = arith.constant 0 : index
    %167 = vector.load %arg14[%166, %c0_76] : memref<8x128xf32, #tpu.memory_space<vmem>>, vector<1x128xf32>
    %168 = arith.minimumf %165, %167 : vector<1x128xf32>
    %169 = arith.index_cast %c3_i32 : i32 to index
    %c0_77 = arith.constant 0 : index
    %170 = vector.load %arg11[%169, %c0_77] : memref<8x128xf32, #tpu.memory_space<vmem>>, vector<1x128xf32>
    %171 = arith.maximumf %142, %170 : vector<1x128xf32>
    %172 = arith.index_cast %c3_i32 : i32 to index
    %c0_78 = arith.constant 0 : index
    %173 = vector.load %arg15[%172, %c0_78] : memref<8x128xf32, #tpu.memory_space<vmem>>, vector<1x128xf32>
    %174 = arith.minimumf %171, %173 : vector<1x128xf32>
    %175 = arith.index_cast %c3_i32 : i32 to index
    %c0_79 = arith.constant 0 : index
    %176 = vector.load %arg12[%175, %c0_79] : memref<8x128xf32, #tpu.memory_space<vmem>>, vector<1x128xf32>
    %177 = arith.maximumf %148, %176 : vector<1x128xf32>
    %178 = arith.index_cast %c3_i32 : i32 to index
    %c0_80 = arith.constant 0 : index
    %179 = vector.load %arg16[%178, %c0_80] : memref<8x128xf32, #tpu.memory_space<vmem>>, vector<1x128xf32>
    %180 = arith.minimumf %177, %179 : vector<1x128xf32>
    %181 = arith.index_cast %c3_i32 : i32 to index
    %c0_81 = arith.constant 0 : index
    %182 = vector.load %arg8[%181, %c0_81] : memref<8x128xf32, #tpu.memory_space<vmem>>, vector<1x128xf32>
    %183 = arith.addf %162, %168 : vector<1x128xf32>
    %184 = arith.addf %182, %183 : vector<1x128xf32>
    %185 = arith.addf %174, %180 : vector<1x128xf32>
    %186 = arith.addf %184, %185 : vector<1x128xf32>
    %187 = arith.index_cast %c3_i32 : i32 to index
    %c0_82 = arith.constant 0 : index
    %188 = vector.load %arg5[%187, %c0_82] : memref<8x128xf32, #tpu.memory_space<vmem>>, vector<1x128xf32>
    tpu.vector_store %arg5[%187, %c0_82], %186 {strides = array<i32>} : memref<8x128xf32, #tpu.memory_space<vmem>>, vector<1x128xf32>,
    %c4_i32 = arith.constant 4 : i32
    %189 = arith.index_cast %c4_i32 : i32 to index
    %c0_83 = arith.constant 0 : index
    %190 = vector.load %arg9[%189, %c0_83] : memref<8x128xf32, #tpu.memory_space<vmem>>, vector<1x128xf32>
    %191 = arith.maximumf %162, %190 : vector<1x128xf32>
    %192 = arith.index_cast %c4_i32 : i32 to index
    %c0_84 = arith.constant 0 : index
    %193 = vector.load %arg13[%192, %c0_84] : memref<8x128xf32, #tpu.memory_space<vmem>>, vector<1x128xf32>
    %194 = arith.minimumf %191, %193 : vector<1x128xf32>
    %195 = arith.index_cast %c4_i32 : i32 to index
    %c0_85 = arith.constant 0 : index
    %196 = vector.load %arg10[%195, %c0_85] : memref<8x128xf32, #tpu.memory_space<vmem>>, vector<1x128xf32>
    %197 = arith.maximumf %168, %196 : vector<1x128xf32>
    %198 = arith.index_cast %c4_i32 : i32 to index
    %c0_86 = arith.constant 0 : index
    %199 = vector.load %arg14[%198, %c0_86] : memref<8x128xf32, #tpu.memory_space<vmem>>, vector<1x128xf32>
    %200 = arith.minimumf %197, %199 : vector<1x128xf32>
    %201 = arith.index_cast %c4_i32 : i32 to index
    %c0_87 = arith.constant 0 : index
    %202 = vector.load %arg11[%201, %c0_87] : memref<8x128xf32, #tpu.memory_space<vmem>>, vector<1x128xf32>
    %203 = arith.maximumf %174, %202 : vector<1x128xf32>
    %204 = arith.index_cast %c4_i32 : i32 to index
    %c0_88 = arith.constant 0 : index
    %205 = vector.load %arg15[%204, %c0_88] : memref<8x128xf32, #tpu.memory_space<vmem>>, vector<1x128xf32>
    %206 = arith.minimumf %203, %205 : vector<1x128xf32>
    %207 = arith.index_cast %c4_i32 : i32 to index
    %c0_89 = arith.constant 0 : index
    %208 = vector.load %arg12[%207, %c0_89] : memref<8x128xf32, #tpu.memory_space<vmem>>, vector<1x128xf32>
    %209 = arith.maximumf %180, %208 : vector<1x128xf32>
    %210 = arith.index_cast %c4_i32 : i32 to index
    %c0_90 = arith.constant 0 : index
    %211 = vector.load %arg16[%210, %c0_90] : memref<8x128xf32, #tpu.memory_space<vmem>>, vector<1x128xf32>
    %212 = arith.minimumf %209, %211 : vector<1x128xf32>
    %213 = arith.index_cast %c4_i32 : i32 to index
    %c0_91 = arith.constant 0 : index
    %214 = vector.load %arg8[%213, %c0_91] : memref<8x128xf32, #tpu.memory_space<vmem>>, vector<1x128xf32>
    %215 = arith.addf %194, %200 : vector<1x128xf32>
    %216 = arith.addf %214, %215 : vector<1x128xf32>
    %217 = arith.addf %206, %212 : vector<1x128xf32>
    %218 = arith.addf %216, %217 : vector<1x128xf32>
    %219 = arith.index_cast %c4_i32 : i32 to index
    %c0_92 = arith.constant 0 : index
    %220 = vector.load %arg5[%219, %c0_92] : memref<8x128xf32, #tpu.memory_space<vmem>>, vector<1x128xf32>
    tpu.vector_store %arg5[%219, %c0_92], %218 {strides = array<i32>} : memref<8x128xf32, #tpu.memory_space<vmem>>, vector<1x128xf32>,
    %c5_i32 = arith.constant 5 : i32
    %221 = arith.index_cast %c5_i32 : i32 to index
    %c0_93 = arith.constant 0 : index
    %222 = vector.load %arg9[%221, %c0_93] : memref<8x128xf32, #tpu.memory_space<vmem>>, vector<1x128xf32>
    %223 = arith.maximumf %194, %222 : vector<1x128xf32>
    %224 = arith.index_cast %c5_i32 : i32 to index
    %c0_94 = arith.constant 0 : index
    %225 = vector.load %arg13[%224, %c0_94] : memref<8x128xf32, #tpu.memory_space<vmem>>, vector<1x128xf32>
    %226 = arith.minimumf %223, %225 : vector<1x128xf32>
    %227 = arith.index_cast %c5_i32 : i32 to index
    %c0_95 = arith.constant 0 : index
    %228 = vector.load %arg10[%227, %c0_95] : memref<8x128xf32, #tpu.memory_space<vmem>>, vector<1x128xf32>
    %229 = arith.maximumf %200, %228 : vector<1x128xf32>
    %230 = arith.index_cast %c5_i32 : i32 to index
    %c0_96 = arith.constant 0 : index
    %231 = vector.load %arg14[%230, %c0_96] : memref<8x128xf32, #tpu.memory_space<vmem>>, vector<1x128xf32>
    %232 = arith.minimumf %229, %231 : vector<1x128xf32>
    %233 = arith.index_cast %c5_i32 : i32 to index
    %c0_97 = arith.constant 0 : index
    %234 = vector.load %arg11[%233, %c0_97] : memref<8x128xf32, #tpu.memory_space<vmem>>, vector<1x128xf32>
    %235 = arith.maximumf %206, %234 : vector<1x128xf32>
    %236 = arith.index_cast %c5_i32 : i32 to index
    %c0_98 = arith.constant 0 : index
    %237 = vector.load %arg15[%236, %c0_98] : memref<8x128xf32, #tpu.memory_space<vmem>>, vector<1x128xf32>
    %238 = arith.minimumf %235, %237 : vector<1x128xf32>
    %239 = arith.index_cast %c5_i32 : i32 to index
    %c0_99 = arith.constant 0 : index
    %240 = vector.load %arg12[%239, %c0_99] : memref<8x128xf32, #tpu.memory_space<vmem>>, vector<1x128xf32>
    %241 = arith.maximumf %212, %240 : vector<1x128xf32>
    %242 = arith.index_cast %c5_i32 : i32 to index
    %c0_100 = arith.constant 0 : index
    %243 = vector.load %arg16[%242, %c0_100] : memref<8x128xf32, #tpu.memory_space<vmem>>, vector<1x128xf32>
    %244 = arith.minimumf %241, %243 : vector<1x128xf32>
    %245 = arith.index_cast %c5_i32 : i32 to index
    %c0_101 = arith.constant 0 : index
    %246 = vector.load %arg8[%245, %c0_101] : memref<8x128xf32, #tpu.memory_space<vmem>>, vector<1x128xf32>
    %247 = arith.addf %226, %232 : vector<1x128xf32>
    %248 = arith.addf %246, %247 : vector<1x128xf32>
    %249 = arith.addf %238, %244 : vector<1x128xf32>
    %250 = arith.addf %248, %249 : vector<1x128xf32>
    %251 = arith.index_cast %c5_i32 : i32 to index
    %c0_102 = arith.constant 0 : index
    %252 = vector.load %arg5[%251, %c0_102] : memref<8x128xf32, #tpu.memory_space<vmem>>, vector<1x128xf32>
    tpu.vector_store %arg5[%251, %c0_102], %250 {strides = array<i32>} : memref<8x128xf32, #tpu.memory_space<vmem>>, vector<1x128xf32>,
    %c6_i32 = arith.constant 6 : i32
    %253 = arith.index_cast %c6_i32 : i32 to index
    %c0_103 = arith.constant 0 : index
    %254 = vector.load %arg9[%253, %c0_103] : memref<8x128xf32, #tpu.memory_space<vmem>>, vector<1x128xf32>
    %255 = arith.maximumf %226, %254 : vector<1x128xf32>
    %256 = arith.index_cast %c6_i32 : i32 to index
    %c0_104 = arith.constant 0 : index
    %257 = vector.load %arg13[%256, %c0_104] : memref<8x128xf32, #tpu.memory_space<vmem>>, vector<1x128xf32>
    %258 = arith.minimumf %255, %257 : vector<1x128xf32>
    %259 = arith.index_cast %c6_i32 : i32 to index
    %c0_105 = arith.constant 0 : index
    %260 = vector.load %arg10[%259, %c0_105] : memref<8x128xf32, #tpu.memory_space<vmem>>, vector<1x128xf32>
    %261 = arith.maximumf %232, %260 : vector<1x128xf32>
    %262 = arith.index_cast %c6_i32 : i32 to index
    %c0_106 = arith.constant 0 : index
    %263 = vector.load %arg14[%262, %c0_106] : memref<8x128xf32, #tpu.memory_space<vmem>>, vector<1x128xf32>
    %264 = arith.minimumf %261, %263 : vector<1x128xf32>
    %265 = arith.index_cast %c6_i32 : i32 to index
    %c0_107 = arith.constant 0 : index
    %266 = vector.load %arg11[%265, %c0_107] : memref<8x128xf32, #tpu.memory_space<vmem>>, vector<1x128xf32>
    %267 = arith.maximumf %238, %266 : vector<1x128xf32>
    %268 = arith.index_cast %c6_i32 : i32 to index
    %c0_108 = arith.constant 0 : index
    %269 = vector.load %arg15[%268, %c0_108] : memref<8x128xf32, #tpu.memory_space<vmem>>, vector<1x128xf32>
    %270 = arith.minimumf %267, %269 : vector<1x128xf32>
    %271 = arith.index_cast %c6_i32 : i32 to index
    %c0_109 = arith.constant 0 : index
    %272 = vector.load %arg12[%271, %c0_109] : memref<8x128xf32, #tpu.memory_space<vmem>>, vector<1x128xf32>
    %273 = arith.maximumf %244, %272 : vector<1x128xf32>
    %274 = arith.index_cast %c6_i32 : i32 to index
    %c0_110 = arith.constant 0 : index
    %275 = vector.load %arg16[%274, %c0_110] : memref<8x128xf32, #tpu.memory_space<vmem>>, vector<1x128xf32>
    %276 = arith.minimumf %273, %275 : vector<1x128xf32>
    %277 = arith.index_cast %c6_i32 : i32 to index
    %c0_111 = arith.constant 0 : index
    %278 = vector.load %arg8[%277, %c0_111] : memref<8x128xf32, #tpu.memory_space<vmem>>, vector<1x128xf32>
    %279 = arith.addf %258, %264 : vector<1x128xf32>
    %280 = arith.addf %278, %279 : vector<1x128xf32>
    %281 = arith.addf %270, %276 : vector<1x128xf32>
    %282 = arith.addf %280, %281 : vector<1x128xf32>
    %283 = arith.index_cast %c6_i32 : i32 to index
    %c0_112 = arith.constant 0 : index
    %284 = vector.load %arg5[%283, %c0_112] : memref<8x128xf32, #tpu.memory_space<vmem>>, vector<1x128xf32>
    tpu.vector_store %arg5[%283, %c0_112], %282 {strides = array<i32>} : memref<8x128xf32, #tpu.memory_space<vmem>>, vector<1x128xf32>,
    %c7_i32 = arith.constant 7 : i32
    %285 = arith.index_cast %c7_i32 : i32 to index
    %c0_113 = arith.constant 0 : index
    %286 = vector.load %arg9[%285, %c0_113] : memref<8x128xf32, #tpu.memory_space<vmem>>, vector<1x128xf32>
    %287 = arith.maximumf %258, %286 : vector<1x128xf32>
    %288 = arith.index_cast %c7_i32 : i32 to index
    %c0_114 = arith.constant 0 : index
    %289 = vector.load %arg13[%288, %c0_114] : memref<8x128xf32, #tpu.memory_space<vmem>>, vector<1x128xf32>
    %290 = arith.minimumf %287, %289 : vector<1x128xf32>
    %291 = arith.index_cast %c7_i32 : i32 to index
    %c0_115 = arith.constant 0 : index
    %292 = vector.load %arg10[%291, %c0_115] : memref<8x128xf32, #tpu.memory_space<vmem>>, vector<1x128xf32>
    %293 = arith.maximumf %264, %292 : vector<1x128xf32>
    %294 = arith.index_cast %c7_i32 : i32 to index
    %c0_116 = arith.constant 0 : index
    %295 = vector.load %arg14[%294, %c0_116] : memref<8x128xf32, #tpu.memory_space<vmem>>, vector<1x128xf32>
    %296 = arith.minimumf %293, %295 : vector<1x128xf32>
    %297 = arith.index_cast %c7_i32 : i32 to index
    %c0_117 = arith.constant 0 : index
    %298 = vector.load %arg11[%297, %c0_117] : memref<8x128xf32, #tpu.memory_space<vmem>>, vector<1x128xf32>
    %299 = arith.maximumf %270, %298 : vector<1x128xf32>
    %300 = arith.index_cast %c7_i32 : i32 to index
    %c0_118 = arith.constant 0 : index
    %301 = vector.load %arg15[%300, %c0_118] : memref<8x128xf32, #tpu.memory_space<vmem>>, vector<1x128xf32>
    %302 = arith.minimumf %299, %301 : vector<1x128xf32>
    %303 = arith.index_cast %c7_i32 : i32 to index
    %c0_119 = arith.constant 0 : index
    %304 = vector.load %arg12[%303, %c0_119] : memref<8x128xf32, #tpu.memory_space<vmem>>, vector<1x128xf32>
    %305 = arith.maximumf %276, %304 : vector<1x128xf32>
    %306 = arith.index_cast %c7_i32 : i32 to index
    %c0_120 = arith.constant 0 : index
    %307 = vector.load %arg16[%306, %c0_120] : memref<8x128xf32, #tpu.memory_space<vmem>>, vector<1x128xf32>
    %308 = arith.minimumf %305, %307 : vector<1x128xf32>
    %309 = arith.index_cast %c7_i32 : i32 to index
    %c0_121 = arith.constant 0 : index
    %310 = vector.load %arg8[%309, %c0_121] : memref<8x128xf32, #tpu.memory_space<vmem>>, vector<1x128xf32>
    %311 = arith.addf %290, %296 : vector<1x128xf32>
    %312 = arith.addf %310, %311 : vector<1x128xf32>
    %313 = arith.addf %302, %308 : vector<1x128xf32>
    %314 = arith.addf %312, %313 : vector<1x128xf32>
    %315 = arith.index_cast %c7_i32 : i32 to index
    %c0_122 = arith.constant 0 : index
    %316 = vector.load %arg5[%315, %c0_122] : memref<8x128xf32, #tpu.memory_space<vmem>>, vector<1x128xf32>
    tpu.vector_store %arg5[%315, %c0_122], %314 {strides = array<i32>} : memref<8x128xf32, #tpu.memory_space<vmem>>, vector<1x128xf32>,
    %c8_i32 = arith.constant 8 : i32
    %c0_123 = arith.constant 0 : index
    %c0_124 = arith.constant 0 : index
    %317 = vector.load %arg7[%c0_123, %c0_124] : memref<8x128xf32, #tpu.memory_space<vmem>>, vector<1x128xf32>
    tpu.vector_store %arg7[%c0_123, %c0_124], %290 {strides = array<i32>} : memref<8x128xf32, #tpu.memory_space<vmem>>, vector<1x128xf32>,
    %c1_125 = arith.constant 1 : index
    %c0_126 = arith.constant 0 : index
    %318 = vector.load %arg7[%c1_125, %c0_126] : memref<8x128xf32, #tpu.memory_space<vmem>>, vector<1x128xf32>
    tpu.vector_store %arg7[%c1_125, %c0_126], %296 {strides = array<i32>} : memref<8x128xf32, #tpu.memory_space<vmem>>, vector<1x128xf32>,
    %c2_127 = arith.constant 2 : index
    %c0_128 = arith.constant 0 : index
    %319 = vector.load %arg7[%c2_127, %c0_128] : memref<8x128xf32, #tpu.memory_space<vmem>>, vector<1x128xf32>
    tpu.vector_store %arg7[%c2_127, %c0_128], %302 {strides = array<i32>} : memref<8x128xf32, #tpu.memory_space<vmem>>, vector<1x128xf32>,
    %c3_129 = arith.constant 3 : index
    %c0_130 = arith.constant 0 : index
    %320 = vector.load %arg7[%c3_129, %c0_130] : memref<8x128xf32, #tpu.memory_space<vmem>>, vector<1x128xf32>
    tpu.vector_store %arg7[%c3_129, %c0_130], %308 {strides = array<i32>} : memref<8x128xf32, #tpu.memory_space<vmem>>, vector<1x128xf32>,
    %c0_i32_131 = arith.constant 0 : i32
    %321 = arith.cmpi eq, %arg1, %c0_i32_131 : i32
    %322 = arith.extui %321 : i1 to i32
    %c0_i32_132 = arith.constant 0 : i32
    %323 = arith.cmpi ne, %322, %c0_i32_132 : i32
    scf.if %323 {
      %cst_133 = arith.constant 5.000000e+00 : f32
      %324 = vector.broadcast %cst_133 : f32 to vector<1x128xf32>
      %325 = arith.mulf %290, %324 : vector<1x128xf32>
      %c0_134 = arith.constant 0 : index
      %c0_135 = arith.constant 0 : index
      %326 = vector.load %arg6[%c0_134, %c0_135] : memref<8x128xf32, #tpu.memory_space<vmem>>, vector<1x128xf32>
      tpu.vector_store %arg6[%c0_134, %c0_135], %325 {strides = array<i32>} : memref<8x128xf32, #tpu.memory_space<vmem>>, vector<1x128xf32>,
      %cst_136 = arith.constant 3.33333325 : f32
      %327 = vector.broadcast %cst_136 : f32 to vector<1x128xf32>
      %328 = arith.mulf %296, %327 : vector<1x128xf32>
      %c1_137 = arith.constant 1 : index
      %c0_138 = arith.constant 0 : index
      %329 = vector.load %arg6[%c1_137, %c0_138] : memref<8x128xf32, #tpu.memory_space<vmem>>, vector<1x128xf32>
      tpu.vector_store %arg6[%c1_137, %c0_138], %328 {strides = array<i32>} : memref<8x128xf32, #tpu.memory_space<vmem>>, vector<1x128xf32>,
      %cst_139 = arith.constant 2.500000e+00 : f32
      %330 = vector.broadcast %cst_139 : f32 to vector<1x128xf32>
      %331 = arith.mulf %302, %330 : vector<1x128xf32>
      %c2_140 = arith.constant 2 : index
      %c0_141 = arith.constant 0 : index
      %332 = vector.load %arg6[%c2_140, %c0_141] : memref<8x128xf32, #tpu.memory_space<vmem>>, vector<1x128xf32>
      tpu.vector_store %arg6[%c2_140, %c0_141], %331 {strides = array<i32>} : memref<8x128xf32, #tpu.memory_space<vmem>>, vector<1x128xf32>,
      %cst_142 = arith.constant 2.000000e+00 : f32
      %333 = vector.broadcast %cst_142 : f32 to vector<1x128xf32>
      %334 = arith.mulf %308, %333 : vector<1x128xf32>
      %c3_143 = arith.constant 3 : index
      %c0_144 = arith.constant 0 : index
      %335 = vector.load %arg6[%c3_143, %c0_144] : memref<8x128xf32, #tpu.memory_space<vmem>>, vector<1x128xf32>
      tpu.vector_store %arg6[%c3_143, %c0_144], %334 {strides = array<i32>} : memref<8x128xf32, #tpu.memory_space<vmem>>, vector<1x128xf32>,
      %cst_145 = arith.constant 0.000000e+00 : f32
      %336 = vector.broadcast %cst_145 : f32 to vector<4x128xf32>
      %c4 = arith.constant 4 : index
      %c0_146 = arith.constant 0 : index
      %337 = vector.load %arg6[%c4, %c0_146] : memref<8x128xf32, #tpu.memory_space<vmem>>, vector<4x128xf32>
      tpu.vector_store %arg6[%c4, %c0_146], %336 {strides = array<i32>} : memref<8x128xf32, #tpu.memory_space<vmem>>, vector<4x128xf32>,
    } else {
    }
    return
  }
  func.func @transform_0(%arg0: i32, %arg1: i32) -> (i32, i32) {
    %c0_i32 = arith.constant 0 : i32
    return %arg1, %arg0 : i32, i32
  }
  func.func @transform_1(%arg0: i32, %arg1: i32) -> (i32, i32) {
    %c0_i32 = arith.constant 0 : i32
    return %arg1, %arg0 : i32, i32
  }
  func.func @transform_2(%arg0: i32, %arg1: i32) -> (i32, i32) {
    %c0_i32 = arith.constant 0 : i32
    %c0_i32_0 = arith.constant 0 : i32
    return %c0_i32, %arg0 : i32, i32
  }
  func.func @transform_3(%arg0: i32, %arg1: i32) -> (i32, i32) {
    %c0_i32 = arith.constant 0 : i32
    return %arg1, %arg0 : i32, i32
  }
  func.func @transform_4(%arg0: i32, %arg1: i32) -> (i32, i32) {
    %c0_i32 = arith.constant 0 : i32
    %c0_i32_0 = arith.constant 0 : i32
    return %c0_i32, %arg0 : i32, i32
  }
}

</mosaic_0001>

<bundles_post_ra>
// kernel: tpu_custom_call.1
= control target key start
LH: loop header
LB: loop body
LE: loop exit
PB: predicated region body
PF: predicated region fallthrough
CT: control target
= control target key end

     0   :  { %10 = vsyncpa [#allocation13], 0  ;;  %s536_s0 = inlined_call_operand.hbm [shape: f32[8,128], index: 0, kind: input, shape index: {}]   ;;  %s537_s1 = inlined_call_operand.hbm [shape: f32[8,128], index: 1, kind: input, shape index: {}]   ;;  %s538_s2 = inlined_call_operand.hbm [shape: f32[8,128], index: 2, kind: input, shape index: {}]   ;;  %s539_s3 = inlined_call_operand.hbm [shape: f32[8,128], index: 3, kind: output, shape index: {0}]   ;;  %s540_s4 = inlined_call_operand.hbm [shape: f32[8,128], index: 4, kind: output, shape index: {1}]  }
   0x1   :  { %11 = vsyncpa [#allocation16], 0 }
   0x2   :  { %12 = vsyncpa [#allocation14], 0  ;;  %s30_s17 = sshll.u32 %s537_s1, 4  ;;  %s31_s17 = int_to_ptr.hbm [resolvable:$true] %s30_s17 }
   0x3   :  { %13 = vsyncpa [#allocation20], 0  ;;  %s490_s18 = smov [#allocation15]   ;;  %s19_s22 = sshll.u32 %s536_s0, 4  ;;  %s20_s22 = int_to_ptr.hbm [resolvable:$true] %s19_s22 }
   0x4   :  { %s32_s19 = sshll.u32 %s490_s18, 4  ;;  %s491_s23 = smov [#allocation12]   ;;  %s33_s19 = int_to_ptr.vmem [resolvable:$true] %s32_s19 }
   0x5   :  { %35 = dma.hbm_to_vmem [thread:$0]  %s31_s17, 128, %s33_s19, [#allocation16]  }
   0x6   :  { %s21_s24 = sshll.u32 %s491_s23, 4  ;;  %s41_s27 = sshll.u32 %s538_s2, 4  ;;  %s22_s24 = int_to_ptr.vmem [resolvable:$true] %s21_s24  ;;  %s42_s27 = int_to_ptr.hbm [resolvable:$true] %s41_s27 }
   0x7   :  { %24 = dma.hbm_to_vmem [thread:$0]  %s20_s22, 128, %s22_s24, [#allocation13]  }
   0x8   :  { %s492_s1 = smov [#allocation17]  }
   0x9   :  { %s43_s28 = sshll.u32 %s492_s1, 4  ;;  %s44_s28 = int_to_ptr.vmem [resolvable:$true] %s43_s28 }
   0xa   :  { %46 = dma.hbm_to_vmem [thread:$0]  %s42_s27, 128, %s44_s28, [#allocation16]  }
   0xb   :  { %482 = dma.done.wait [#allocation13], 128  }
   0xc   :  { %483 = vsyncadd [#allocation13], 4294967168 }
   0xd   :  { %484 = dma.done.wait [#allocation16], 256  }
   0xe   :  { %485 = vsyncadd [#allocation16], 4294967040  ;;  %v63_v0 = vld [vmem:[#allocation17] sm:$0x1]  ;;  %v66_v1 = vld [vmem:[#allocation17 + $0x1] sm:$0x1] }
   0xf   :  { %v69_v2 = vld [vmem:[#allocation17 + $0x2] sm:$0x1]  ;;  %v64_v3 = vmul.f32 0.2, %v63_v0  ;;  %v67_v4 = vmul.f32 0.3, %v66_v1 }
  0x10   :  { %v70_v5 = vmul.f32 0.4, %v69_v2  ;;  %v72_v6 = vld [vmem:[#allocation17 + $0x3] sm:$0x1]  ;;  %v75_v7 = vld [vmem:[#allocation12] sm:$0xff]  ;;  %v76_v8 = vld [vmem:[#allocation15] sm:$0xff] }
  0x11   :  { %65 = vst [vmem:[#allocation2] sm:$0x1] %v64_v3  ;;  %v73_v9 = vmul.f32 0.5, %v72_v6  ;;  %v77_v10 = vsub.f32 %v75_v7, %v76_v8  ;;  %v93_v13 = vmul.f32 0.1, %v75_v7  ;;  %s494_s0 = smov [#allocation19]  }
  0x12   :  { %68 = vst [vmem:[#allocation2 + $0x1] sm:$0x1] %v67_v4  ;;  %s336_s2 = sshll.u32 %s494_s0, 4  ;;  %s338_s5 = sshll.u32 %s540_s4, 4  ;;  %s337_s2 = int_to_ptr.vmem [resolvable:$true] %s336_s2  ;;  %s339_s5 = int_to_ptr.hbm [resolvable:$true] %s338_s5 }
  0x13   :  { %71 = vst [vmem:[#allocation2 + $0x2] sm:$0x1] %v70_v5  ;;  %v78_v11 = vmul.f32 %v77_v10, %v77_v10  ;;  %s495_s6 = smov [#allocation18]   ;;  %s327_s10 = sshll.u32 %s539_s3, 4  ;;  %s328_s10 = int_to_ptr.hbm [resolvable:$true] %s327_s10 }
  0x14   :  { %74 = vst [vmem:[#allocation2 + $0x3] sm:$0x1] %v73_v9  ;;  %s325_s7 = sshll.u32 %s495_s6, 4  ;;  %s326_s7 = int_to_ptr.vmem [resolvable:$true] %s325_s7 }
  0x15   :  { %v79_v12 = vadd.f32 1e-10, %v78_v11  ;;  %95 = vst [vmem:[#allocation3] sm:$0xff] %v93_v13 }
  0x17   :  { %360 = vrsqrt.f32 %v79_v12  ;;  %vm87_vm0 = vcmp.eq.f32.partialorder %v79_v12, inf  ;;  %v90_v20 = vand.u32 2147483648, %v79_v12  ;;  %vm89_vm1 = vcmp.eq.f32.partialorder %v79_v12, 0.0 }
  0x18   :  { %v124_v45 = vld [vmem:[#allocation2] sm:$0x1] }
  0x19   :  { %v125_v46 = vld [vmem:[#allocation2 + $0x1] sm:$0x1] }
  0x1a   :  { %v126_v47 = vld [vmem:[#allocation2 + $0x2] sm:$0x1] }
  0x1b   :  { %v127_v49 = vld [vmem:[#allocation2 + $0x3] sm:$0x1] }
  0x1c   :  { %v144_v1 = vld [vmem:[#allocation3] sm:$0x1] }
  0x1d   :  { %v361_v14 = vpop.eup %360 }
  0x1e   :  { %v81_v15 = vmul.f32 %v361_v14, %v79_v12 }
  0x20   :  { %v82_v16 = vmul.f32 %v361_v14, %v81_v15 }
  0x22   :  { %v83_v17 = vmul.f32 0.5, %v82_v16 }
  0x24   :  { %v84_v18 = vsub.f32 1.5, %v83_v17 }
  0x26   :  { %v85_v19 = vmul.f32 %v361_v14, %v84_v18 }
  0x28   :  { %v86_v21 = vmul.f32 %v85_v19, %v79_v12 }
  0x2a   :  { %v88_v22 = vsel %vm87_vm0, %v79_v12, %v86_v21  ;;  %v166_v21 = vld [vmem:[#allocation3 + $0x1] sm:$0x1] }
  0x2b   :  { %v91_v23 = vsel %vm89_vm1, %v90_v20, %v88_v22 }
  0x2c   :  { %v92_v24 = vmul.f32 2.0, %v91_v23 }
  0x2e   :  { %v96_v25 = vadd.f32 0.1, %v92_v24  ;;  %v97_v26 = vadd.f32 0.2, %v92_v24  ;;  %v98_v27 = vadd.f32 0.3, %v92_v24 }
  0x2f   :  { %v99_v28 = vadd.f32 0.4, %v92_v24 }
  0x30   :  { %v100_v29 = vsub.f32 %v75_v7, %v96_v25  ;;  %v103_v30 = vsub.f32 %v75_v7, %v97_v26  ;;  %v106_v31 = vsub.f32 %v75_v7, %v98_v27  ;;  %v112_v32 = vadd.f32 %v96_v25, %v75_v7 }
  0x31   :  { %v109_v33 = vsub.f32 %v75_v7, %v99_v28  ;;  %v115_v34 = vadd.f32 %v97_v26, %v75_v7  ;;  %v118_v38 = vadd.f32 %v98_v27, %v75_v7  ;;  %v121_v40 = vadd.f32 %v99_v28, %v75_v7 }
  0x32   :  { %v101_v35 = vmul.f32 0.2, %v100_v29  ;;  %v104_v36 = vmul.f32 0.3, %v103_v30  ;;  %v107_v37 = vmul.f32 0.4, %v106_v31 }
  0x33   :  { %v110_v39 = vmul.f32 0.5, %v109_v33  ;;  %v113_v41 = vmul.f32 0.2, %v112_v32  ;;  %v116_v42 = vmul.f32 0.3, %v115_v34  ;;  %v122_v44 = vmul.f32 0.5, %v121_v40 }
  0x34   :  { %102 = vst [vmem:[#allocation4] sm:$0xff] %v101_v35  ;;  %v119_v43 = vmul.f32 0.4, %v118_v38 }
  0x35   :  { %105 = vst [vmem:[#allocation5] sm:$0xff] %v104_v36 }
  0x36   :  { %108 = vst [vmem:[#allocation6] sm:$0xff] %v107_v37 }
  0x37   :  { %111 = vst [vmem:[#allocation7] sm:$0xff] %v110_v39 }
  0x38   :  { %114 = vst [vmem:[#allocation8] sm:$0xff] %v113_v41 }
  0x39   :  { %117 = vst [vmem:[#allocation9] sm:$0xff] %v116_v42  ;;  %v188_v42 = vld [vmem:[#allocation3 + $0x2] sm:$0x1] }
  0x3a   :  { %120 = vst [vmem:[#allocation10] sm:$0xff] %v119_v43 }
  0x3b   :  { %123 = vst [vmem:[#allocation11] sm:$0xff] %v122_v44  ;;  %v128_v48 = vld [vmem:[#allocation4] sm:$0x1]  ;;  %v150_v62 = vld [vmem:[#allocation4 + $0x1] sm:$0x1] }
  0x3c   :  { %v129_v50 = vmax.f32 %v124_v45, %v128_v48  ;;  %v132_v51 = vld [vmem:[#allocation5] sm:$0x1]  ;;  %v154_v3 = vld [vmem:[#allocation5 + $0x1] sm:$0x1]  ;;  %v172_v18 = vld [vmem:[#allocation4 + $0x2] sm:$0x1] }
  0x3d   :  { %v133_v52 = vmax.f32 %v125_v46, %v132_v51  ;;  %v136_v53 = vld [vmem:[#allocation6] sm:$0x1]  ;;  %v158_v8 = vld [vmem:[#allocation6 + $0x1] sm:$0x1]  ;;  %v176_v23 = vld [vmem:[#allocation5 + $0x2] sm:$0x1] }
  0x3e   :  { %v137_v54 = vmax.f32 %v126_v47, %v136_v53  ;;  %v140_v55 = vld [vmem:[#allocation7] sm:$0x1]  ;;  %v162_v12 = vld [vmem:[#allocation7 + $0x1] sm:$0x1]  ;;  %v180_v29 = vld [vmem:[#allocation6 + $0x2] sm:$0x1] }
  0x3f   :  { %v130_v56 = vld [vmem:[#allocation8] sm:$0x1]  ;;  %v141_v57 = vmax.f32 %v127_v49, %v140_v55  ;;  %v152_v6 = vld [vmem:[#allocation8 + $0x1] sm:$0x1]  ;;  %v174_v27 = vld [vmem:[#allocation8 + $0x2] sm:$0x1] }
  0x40   :  { %v131_v58 = vmin.f32 %v129_v50, %v130_v56  ;;  %v134_v59 = vld [vmem:[#allocation9] sm:$0x1]  ;;  %v156_v10 = vld [vmem:[#allocation9 + $0x1] sm:$0x1]  ;;  %v178_v31 = vld [vmem:[#allocation9 + $0x2] sm:$0x1] }
  0x41   :  { %v135_v60 = vmin.f32 %v133_v52, %v134_v59  ;;  %v138_v61 = vld [vmem:[#allocation10] sm:$0x1]  ;;  %v160_v16 = vld [vmem:[#allocation10 + $0x1] sm:$0x1]  ;;  %v184_v33 = vld [vmem:[#allocation7 + $0x2] sm:$0x1] }
  0x42   :  { %v139_v63 = vmin.f32 %v137_v54, %v138_v61  ;;  %v142_v0 = vld [vmem:[#allocation11] sm:$0x1]  ;;  %v151_v2 = vmax.f32 %v131_v58, %v150_v62  ;;  %v164_v20 = vld [vmem:[#allocation11 + $0x1] sm:$0x1]  ;;  %v182_v37 = vld [vmem:[#allocation10 + $0x2] sm:$0x1] }
  0x43   :  { %v143_v4 = vmin.f32 %v141_v57, %v142_v0  ;;  %v145_v5 = vadd.f32 %v135_v60, %v131_v58  ;;  %v155_v7 = vmax.f32 %v135_v60, %v154_v3  ;;  %v194_v39 = vld [vmem:[#allocation4 + $0x3] sm:$0x1]  ;;  %v186_v41 = vld [vmem:[#allocation11 + $0x2] sm:$0x1]  ;;  %v198_v44 = vld [vmem:[#allocation5 + $0x3] sm:$0x1] }
  0x44   :  { %v153_v9 = vmin.f32 %v151_v2, %v152_v6  ;;  %v159_v11 = vmax.f32 %v139_v63, %v158_v8  ;;  %v196_v48 = vld [vmem:[#allocation8 + $0x3] sm:$0x1]  ;;  %v202_v50 = vld [vmem:[#allocation6 + $0x3] sm:$0x1]  ;;  %v200_v52 = vld [vmem:[#allocation9 + $0x3] sm:$0x1] }
  0x45   :  { %v146_v13 = vadd.f32 %v145_v5, %v144_v1  ;;  %v147_v14 = vadd.f32 %v143_v4, %v139_v63  ;;  %v157_v15 = vmin.f32 %v155_v7, %v156_v10  ;;  %v163_v17 = vmax.f32 %v143_v4, %v162_v12  ;;  %v206_v54 = vld [vmem:[#allocation7 + $0x3] sm:$0x1]  ;;  %v204_v58 = vld [vmem:[#allocation10 + $0x3] sm:$0x1]  ;;  %v216_v60 = vld [vmem:[#allocation4 + $0x4] sm:$0x1] }
  0x46   :  { %v161_v19 = vmin.f32 %v159_v11, %v160_v16  ;;  %v173_v22 = vmax.f32 %v153_v9, %v172_v18  ;;  %v208_v62 = vld [vmem:[#allocation11 + $0x3] sm:$0x1]  ;;  %v220_v1 = vld [vmem:[#allocation5 + $0x4] sm:$0x1]  ;;  %v218_v5 = vld [vmem:[#allocation8 + $0x4] sm:$0x1] }
  0x47   :  { %v148_v24 = vadd.f32 %v147_v14, %v146_v13  ;;  %v165_v25 = vmin.f32 %v163_v17, %v164_v20  ;;  %v167_v26 = vadd.f32 %v157_v15, %v153_v9  ;;  %v177_v28 = vmax.f32 %v157_v15, %v176_v23  ;;  %v210_v63 = vld [vmem:[#allocation3 + $0x3] sm:$0x1]  ;;  %v224_v7 = vld [vmem:[#allocation6 + $0x4] sm:$0x1]  ;;  %v222_v9 = vld [vmem:[#allocation9 + $0x4] sm:$0x1] }
  0x48   :  { %v175_v30 = vmin.f32 %v173_v22, %v174_v27  ;;  %v181_v32 = vmax.f32 %v161_v19, %v180_v29  ;;  %v228_v11 = vld [vmem:[#allocation7 + $0x4] sm:$0x1]  ;;  %v226_v16 = vld [vmem:[#allocation10 + $0x4] sm:$0x1]  ;;  %v238_v18 = vld [vmem:[#allocation4 + $0x5] sm:$0x1] }
  0x49   :  { %149 = vst [vmem:[#allocation18] sm:$0x1] %v148_v24  ;;  %v168_v34 = vadd.f32 %v167_v26, %v166_v21  ;;  %v169_v35 = vadd.f32 %v165_v25, %v161_v19  ;;  %v179_v36 = vmin.f32 %v177_v28, %v178_v31  ;;  %v185_v38 = vmax.f32 %v165_v25, %v184_v33  ;;  %v232_v12 = vld [vmem:[#allocation3 + $0x4] sm:$0x1]  ;;  %v242_v22 = vld [vmem:[#allocation5 + $0x5] sm:$0x1] }
  0x4a   :  { %v183_v40 = vmin.f32 %v181_v32, %v182_v37  ;;  %v195_v43 = vmax.f32 %v175_v30, %v194_v39  ;;  %v230_v20 = vld [vmem:[#allocation11 + $0x4] sm:$0x1]  ;;  %v240_v26 = vld [vmem:[#allocation8 + $0x5] sm:$0x1]  ;;  %v246_v28 = vld [vmem:[#allocation6 + $0x5] sm:$0x1] }
  0x4b   :  { %v170_v45 = vadd.f32 %v169_v35, %v168_v34  ;;  %v187_v46 = vmin.f32 %v185_v38, %v186_v41  ;;  %v189_v47 = vadd.f32 %v179_v36, %v175_v30  ;;  %v199_v49 = vmax.f32 %v179_v36, %v198_v44  ;;  %v244_v31 = vld [vmem:[#allocation9 + $0x5] sm:$0x1]  ;;  %v250_v33 = vld [vmem:[#allocation7 + $0x5] sm:$0x1]  ;;  %v248_v37 = vld [vmem:[#allocation10 + $0x5] sm:$0x1] }
  0x4c   :  { %v197_v51 = vmin.f32 %v195_v43, %v196_v48  ;;  %v203_v53 = vmax.f32 %v183_v40, %v202_v50  ;;  %v493_v29 = vmov 0.0   ;;  %v260_v39 = vld [vmem:[#allocation4 + $0x6] sm:$0x1]  ;;  %v252_v41 = vld [vmem:[#allocation11 + $0x5] sm:$0x1] }
  0x4d   :  { %171 = vst [vmem:[#allocation18 + $0x1] sm:$0x1] %v170_v45  ;;  %v190_v55 = vadd.f32 %v189_v47, %v188_v42  ;;  %v191_v56 = vadd.f32 %v187_v46, %v183_v40  ;;  %v201_v57 = vmin.f32 %v199_v49, %v200_v52  ;;  %v207_v59 = vmax.f32 %v187_v46, %v206_v54  ;;  %v254_v42 = vld [vmem:[#allocation3 + $0x5] sm:$0x1]  ;;  %v264_v44 = vld [vmem:[#allocation5 + $0x6] sm:$0x1] }
  0x4e   :  { %v205_v61 = vmin.f32 %v203_v53, %v204_v58  ;;  %v217_v0 = vmax.f32 %v197_v51, %v216_v60  ;;  %319 = vst [vmem:[#allocation19 + $0x4] sm:$0xf] %v493_v29  ;;  %v268_v49 = vld [vmem:[#allocation6 + $0x6] sm:$0x1]  ;;  %v262_v50 = vld [vmem:[#allocation8 + $0x6] sm:$0x1] }
  0x4f   :  { %v192_v2 = vadd.f32 %v191_v56, %v190_v55  ;;  %v209_v3 = vmin.f32 %v207_v59, %v208_v62  ;;  %v211_v4 = vadd.f32 %v201_v57, %v197_v51  ;;  %v221_v6 = vmax.f32 %v201_v57, %v220_v1  ;;  %v272_v52 = vld [vmem:[#allocation7 + $0x6] sm:$0x1]  ;;  %v266_v54 = vld [vmem:[#allocation9 + $0x6] sm:$0x1]  ;;  %v270_v57 = vld [vmem:[#allocation10 + $0x6] sm:$0x1] }
  0x50   :  { %v219_v8 = vmin.f32 %v217_v0, %v218_v5  ;;  %v225_v10 = vmax.f32 %v205_v61, %v224_v7  ;;  %v282_v59 = vld [vmem:[#allocation4 + $0x7] sm:$0x1]  ;;  %v274_v62 = vld [vmem:[#allocation11 + $0x6] sm:$0x1]  ;;  %v286_v0 = vld [vmem:[#allocation5 + $0x7] sm:$0x1] }
  0x51   :  { %193 = vst [vmem:[#allocation18 + $0x2] sm:$0x1] %v192_v2  ;;  %v212_v13 = vadd.f32 %v211_v4, %v210_v63  ;;  %v213_v14 = vadd.f32 %v209_v3, %v205_v61  ;;  %v223_v15 = vmin.f32 %v221_v6, %v222_v9  ;;  %v229_v17 = vmax.f32 %v209_v3, %v228_v11  ;;  %v276_v1 = vld [vmem:[#allocation3 + $0x6] sm:$0x1]  ;;  %v284_v4 = vld [vmem:[#allocation8 + $0x7] sm:$0x1] }
  0x52   :  { %v227_v19 = vmin.f32 %v225_v10, %v226_v16  ;;  %v239_v21 = vmax.f32 %v219_v8, %v238_v18  ;;  %v290_v6 = vld [vmem:[#allocation6 + $0x7] sm:$0x1]  ;;  %v288_v9 = vld [vmem:[#allocation9 + $0x7] sm:$0x1]  ;;  %v294_v11 = vld [vmem:[#allocation7 + $0x7] sm:$0x1] }
  0x53   :  { %v214_v23 = vadd.f32 %v213_v14, %v212_v13  ;;  %v231_v24 = vmin.f32 %v229_v17, %v230_v20  ;;  %v233_v25 = vadd.f32 %v223_v15, %v219_v8  ;;  %v243_v27 = vmax.f32 %v223_v15, %v242_v22  ;;  %v292_v13 = vld [vmem:[#allocation10 + $0x7] sm:$0x1]  ;;  %v296_v18 = vld [vmem:[#allocation11 + $0x7] sm:$0x1] }
  0x54   :  { %v241_v30 = vmin.f32 %v239_v21, %v240_v26  ;;  %v247_v32 = vmax.f32 %v227_v19, %v246_v28 }
  0x55   :  { %215 = vst [vmem:[#allocation18 + $0x3] sm:$0x1] %v214_v23  ;;  %v234_v34 = vadd.f32 %v233_v25, %v232_v12  ;;  %v235_v35 = vadd.f32 %v231_v24, %v227_v19  ;;  %v245_v36 = vmin.f32 %v243_v27, %v244_v31  ;;  %v251_v38 = vmax.f32 %v231_v24, %v250_v33  ;;  %v298_v19 = vld [vmem:[#allocation3 + $0x7] sm:$0x1] }
  0x56   :  { %v249_v40 = vmin.f32 %v247_v32, %v248_v37  ;;  %v261_v43 = vmax.f32 %v241_v30, %v260_v39 }
  0x57   :  { %v236_v45 = vadd.f32 %v235_v35, %v234_v34  ;;  %v253_v46 = vmin.f32 %v251_v38, %v252_v41  ;;  %v255_v47 = vadd.f32 %v245_v36, %v241_v30  ;;  %v265_v48 = vmax.f32 %v245_v36, %v264_v44 }
  0x58   :  { %v269_v51 = vmax.f32 %v249_v40, %v268_v49  ;;  %v263_v53 = vmin.f32 %v261_v43, %v262_v50 }
  0x59   :  { %237 = vst [vmem:[#allocation18 + $0x4] sm:$0x1] %v236_v45  ;;  %v256_v55 = vadd.f32 %v255_v47, %v254_v42  ;;  %v257_v56 = vadd.f32 %v253_v46, %v249_v40  ;;  %v273_v58 = vmax.f32 %v253_v46, %v272_v52  ;;  %v267_v60 = vmin.f32 %v265_v48, %v266_v54 }
  0x5a   :  { %v271_v61 = vmin.f32 %v269_v51, %v270_v57  ;;  %v283_v63 = vmax.f32 %v263_v53, %v282_v59 }
  0x5b   :  { %v258_v2 = vadd.f32 %v257_v56, %v256_v55  ;;  %v275_v3 = vmin.f32 %v273_v58, %v274_v62  ;;  %v287_v5 = vmax.f32 %v267_v60, %v286_v0  ;;  %v277_v7 = vadd.f32 %v267_v60, %v263_v53 }
  0x5c   :  { %v285_v8 = vmin.f32 %v283_v63, %v284_v4  ;;  %v291_v10 = vmax.f32 %v271_v61, %v290_v6 }
  0x5d   :  { %259 = vst [vmem:[#allocation18 + $0x5] sm:$0x1] %v258_v2  ;;  %v289_v12 = vmin.f32 %v287_v5, %v288_v9  ;;  %v295_v14 = vmax.f32 %v275_v3, %v294_v11  ;;  %v278_v15 = vadd.f32 %v277_v7, %v276_v1  ;;  %v279_v16 = vadd.f32 %v275_v3, %v271_v61 }
  0x5e   :  { %304 = vst [vmem:[#allocation2] sm:$0x1] %v285_v8  ;;  %v293_v17 = vmin.f32 %v291_v10, %v292_v13  ;;  %v311_v22 = vmul.f32 5.0, %v285_v8 }
  0x5f   :  { %305 = vst [vmem:[#allocation2 + $0x1] sm:$0x1] %v289_v12  ;;  %v297_v20 = vmin.f32 %v295_v14, %v296_v18  ;;  %v280_v21 = vadd.f32 %v279_v16, %v278_v15  ;;  %v299_v23 = vadd.f32 %v289_v12, %v285_v8  ;;  %v313_v24 = vmul.f32 3.3333333, %v289_v12 }
  0x60   :  { %306 = vst [vmem:[#allocation2 + $0x2] sm:$0x1] %v293_v17  ;;  %v315_v25 = vmul.f32 2.5, %v293_v17 }
  0x61   :  { %307 = vst [vmem:[#allocation2 + $0x3] sm:$0x1] %v297_v20  ;;  %v300_v26 = vadd.f32 %v299_v23, %v298_v19  ;;  %v301_v27 = vadd.f32 %v297_v20, %v293_v17  ;;  %v317_v28 = vmul.f32 2.0, %v297_v20 }
  0x62   :  { %281 = vst [vmem:[#allocation18 + $0x6] sm:$0x1] %v280_v21 }
  0x63   :  { %312 = vst [vmem:[#allocation19] sm:$0x1] %v311_v22  ;;  %v302_v29 = vadd.f32 %v301_v27, %v300_v26 }
  0x64   :  { %314 = vst [vmem:[#allocation19 + $0x1] sm:$0x1] %v313_v24 }
  0x65   :  { %316 = vst [vmem:[#allocation19 + $0x2] sm:$0x1] %v315_v25 }
  0x66   :  { %318 = vst [vmem:[#allocation19 + $0x3] sm:$0x1] %v317_v28 }
  0x67   :  { %303 = vst [vmem:[#allocation18 + $0x7] sm:$0x1] %v302_v29  ;;  %341 = dma.vmem_to_hbm [thread:$0]  %s337_s2, 128, %s339_s5, [#allocation20]  }
  0x68   :  { %330 = dma.vmem_to_hbm [thread:$0]  %s326_s7, 128, %s328_s10, [#allocation14]  }
  0x69   :  { %486 = dma.done.wait [#allocation14], 128  }
  0x6a   :  { %487 = vsyncadd [#allocation14], 4294967168 }
  0x6b   :  { %488 = dma.done.wait [#allocation20], 128  }
  0x6c   :  { %489 = vsyncadd [#allocation20], 4294967168 }
  0x6d   :  { %350 = vsyncpa [#allocation13], 1 }
  0x6e   :  { %351 = vsyncpa [#allocation16], 1 }
  0x6f   :  { %352 = vsyncpa [#allocation14], 1 }
  0x70   :  { %353 = vsyncpa [#allocation20], 1 }

</bundles_post_ra>
